<compile_context>
chip_gen: v7x
topology: tpu7x:2x2x1
jax: 0.10.0
libtpu: 0.0.40
codegen_flags: <defaults>
</compile_context>

<pallas_src>
import functools

import jax
import jax.numpy as jnp
from jax import lax
from jax.experimental import pallas as pl
from jax.experimental.pallas import tpu as pltpu


def _round_up(x, m):
    return ((x + m - 1) // m) * m


# ---------------------------------------------------------------------------
# Generation-aware hardware parameters.
# ---------------------------------------------------------------------------
def _tpu_generation():
    kind = ""
    try:
        kind = jax.devices()[0].device_kind.lower()
    except Exception:
        pass
    if ("v5 lite" in kind) or ("v5e" in kind) or ("v5litepod" in kind):
        return "v5e"
    if "v6" in kind:
        return "v6e"
    if ("v7" in kind) or ("tpu7" in kind) or ("tpu 7" in kind):
        return "v7x"
    return "unknown"


def _hw_params():
    """(generation, vmem_limit_bytes, tm_target, fcol_buffer_count)."""
    gen = _tpu_generation()
    if gen == "v7x":      # 64 MiB physical VMEM, ~3.2 TB/s HBM, 2 TC/chip
        vmem_limit, tm_target, fcol_buffers = 48 * 1024 * 1024, 512, 2
    elif gen == "v6e":    # 128 MiB physical, ~1.4 TB/s HBM -> big reuse tile
        vmem_limit, tm_target, fcol_buffers = 96 * 1024 * 1024, 1024, 2
    elif gen == "v5e":    # 128 MiB physical, lowest HBM BW -> deeper pipeline
        vmem_limit, tm_target, fcol_buffers = 96 * 1024 * 1024, 256, 3
    else:                 # unknown chip: conservative defaults
        vmem_limit, tm_target, fcol_buffers = 48 * 1024 * 1024, 256, 2
    try:  # clamp to the actual chip's VMEM if the query is available
        cap = int(pltpu.get_tpu_info().vmem_capacity_bytes)
        vmem_limit = min(vmem_limit, (cap * 3) // 4)
    except Exception:
        pass
    return gen, vmem_limit, tm_target, fcol_buffers


def _pick_tiles(n, d_pad, gen, vmem_limit, tm_target, fcol_buffers, op_bytes):
    """Pick (tm, tn): tn lane/MXU friendly, tn | tm, tm sized for fcol reuse."""
    if n <= 128:
        t = _round_up(max(n, 16), 16)      # single tile, bf16 sublane aligned
        return t, t
    tn = 256 if n >= 256 else 128
    budget = int(vmem_limit * 0.75)

    def fits(tm):
        need = (2 * tm * d_pad * op_bytes            # frow, double-buffered
                + fcol_buffers * tn * d_pad * op_bytes   # fcol pipeline
                + 2 * tm * 128 * 4                   # lane-dense accumulators
                + 2 * tm * 128 * 4                   # out block buffers
                + 6 * tm * tn * 4)                   # sim/exp/mask temporaries
        return need <= budget

    tm = max(tn, (max(tm_target, tn) // tn) * tn)
    while tm > tn and not fits(tm):
        tm -= tn
    tm = min(tm, _round_up(n, tn))                   # avoid excessive row pad
    if gen == "v7x":
        # Keep >= 2 row tiles so the "parallel" axis actually feeds both TCs.
        while tm > tn and (_round_up(n, tm) // tm) < 2:
            tm = max(tn, ((tm // 2) // tn) * tn)
    return tm, tn


# ---------------------------------------------------------------------------
# Prologue kernel: per-row L2 normalization, 1/sqrt(T) folded, feature-dim
# zero padding done in-kernel (input block is (rows, d), output (rows, d_pad)).
# ---------------------------------------------------------------------------
def _normalize_kernel(f_ref, o_ref, *, inv_sqrt_t, d, d_pad):
    x = f_ref[...].astype(jnp.float32)
    ssq = jnp.sum(x * x, axis=1, keepdims=True)
    # F.normalize(dim=1, eps=1e-12): x / max(||x||,1e-12) == x*rsqrt(max(ssq,1e-24))
    inv = lax.rsqrt(jnp.maximum(ssq, 1e-24)) * inv_sqrt_t
    xn = (x * inv).astype(o_ref.dtype)
    if d_pad > d:
        o_ref[...] = jnp.zeros(o_ref.shape, o_ref.dtype)   # zero padded lanes
    o_ref[:, :d] = xn


# ---------------------------------------------------------------------------
# Main kernel: tiled similarity with online, lane-dense per-row accumulators.
# ---------------------------------------------------------------------------
def _confusion_tile_kernel(frow_ref, fcol_ref, out_ref, denom_acc, pos_acc, *,
                           tm, tn, acc_w, n_valid, n_views,
                           groups_tile_aligned, has_col_padding,
                           scale_out, inv_pos_count):
    i = pl.program_id(0)
    j = pl.program_id(1)
    nj = pl.num_programs(1)

    @pl.when(j == 0)
    def _():
        denom_acc[...] = jnp.zeros_like(denom_acc)
        pos_acc[...] = jnp.zeros_like(pos_acc)

    # A.A^T on the MXU, f32 accumulation. 1/sqrt(T) is folded into both
    # operands, so sim == raw_sim / T.
    sim = lax.dot_general(
        frow_ref[...], fcol_ref[...],
        dimension_numbers=(((1,), (1,)), ((), ())),
        preferred_element_type=jnp.float32)               # (tm, tn) f32
    # Faithful to the reference: no row-max subtraction before exp.
    e = jnp.exp(sim)

    def lane_fold(x):
        # (tm, tn) -> (tm, acc_w): 128-lane-aligned vreg slices + VALU adds.
        # The expensive cross-lane (XLU) sum is deferred to the finalize.
        folded = x[:, 0:acc_w]
        for c in range(1, tn // acc_w):
            folded = folded + x[:, c * acc_w:(c + 1) * acc_w]
        return folded

    row_start = i * tm
    col_start = j * tn

    def masked_update():
        row_idx = row_start + lax.broadcasted_iota(jnp.int32, (tm, 1), 0)
        col_idx = col_start + lax.broadcasted_iota(jnp.int32, (1, tn), 1)
        not_diag = row_idx != col_idx
        if has_col_padding:
            not_diag = jnp.logical_and(not_diag, col_idx < n_valid)
        pos = jnp.logical_and(not_diag,
                              (row_idx // n_views) == (col_idx // n_views))
        denom_acc[...] += lane_fold(jnp.where(not_diag, e, 0.0))
        pos_acc[...] += lane_fold(jnp.where(pos, sim, 0.0))

    if groups_tile_aligned:
        # Diagonal entries / positives only exist where the row and column
        # ranges of the tile overlap; padded columns only where the tile
        # extends past n_valid. All other tiles skip the mask work entirely.
        needs_mask = jnp.logical_and(col_start < row_start + tm,
                                     row_start < col_start + tn)
        if has_col_padding:
            needs_mask = jnp.logical_or(needs_mask, col_start + tn > n_valid)

        @pl.when(jnp.logical_not(needs_mask))
        def _():
            denom_acc[...] += lane_fold(e)

        @pl.when(needs_mask)
        def _():
            masked_update()
    else:
        masked_update()

    @pl.when(j == nj - 1)
    def _():
        denom = jnp.sum(denom_acc[...], axis=1, keepdims=True)    # (tm, 1)
        pos_sum = jnp.sum(pos_acc[...], axis=1, keepdims=True)    # (tm, 1)
        # mask.sum(1) == n_views - 1 (compile-time constant).
        mean_log_prob_pos = pos_sum * inv_pos_count - jnp.log(denom)
        loss = (-scale_out) * mean_log_prob_pos
        # Lane-dense (tm, 128) store: unmasked vst; column 0 is read back.
        out_ref[...] = jnp.broadcast_to(loss, out_ref.shape).astype(out_ref.dtype)


# ---------------------------------------------------------------------------
# Wrapper
# ---------------------------------------------------------------------------
def confusion_loss(features, temperature=0.07, base_temperature=0.07,
                   mxu_dtype=jnp.bfloat16):
    """features: [bsz, n_views, ...] (>= 3 dims). Returns scalar loss."""
    if features.ndim < 3:
        raise ValueError("`features` needs to be [bsz, n_views, ...]")
    bsz, n_views = features.shape[0], features.shape[1]

    # Batch-major flatten (the scalar loss is invariant to the torch
    # view-major row permutation; positives become row // n_views groups).
    f = features.reshape(bsz * n_views, -1)
    n, d = f.shape
    d_pad = _round_up(d, 128)

    gen, vmem_limit, tm_target, fcol_buffers = _hw_params()
    op_bytes = jnp.dtype(mxu_dtype).itemsize
    tm, tn = _pick_tiles(n, d_pad, gen, vmem_limit, tm_target, fcol_buffers,
                         op_bytes)
    n_pad = _round_up(n, tm)                 # tn | tm  =>  tn | n_pad
    acc_w = min(128, tn)
    groups_tile_aligned = (tm % n_views == 0) and (tn % n_views == 0)
    has_col_padding = n_pad > n

    # Rows-only padding in the wrapper; the feature-dim padding happens inside
    # the prologue kernel (no (n_pad, d_pad) f32 HBM round trip).
    if n_pad > n:
        f = jnp.pad(f, ((0, n_pad - n), (0, 0)))

    # --- prologue: normalize once, fold 1/sqrt(T), cast to MXU dtype ---------
    inv_sqrt_t = 1.0 / (float(temperature) ** 0.5)
    fn = pl.pallas_call(
        functools.partial(_normalize_kernel, inv_sqrt_t=inv_sqrt_t,
                          d=d, d_pad=d_pad),
        out_shape=jax.ShapeDtypeStruct((n_pad, d_pad), mxu_dtype),
        grid_spec=pltpu.PrefetchScalarGridSpec(
            num_scalar_prefetch=0,
            grid=(n_pad // tn,),
            in_specs=[pl.BlockSpec((tn, d), lambda i: (i, 0))],
            out_specs=pl.BlockSpec((tn, d_pad), lambda i: (i, 0))),
        compiler_params=pltpu.CompilerParams(
            dimension_semantics=("parallel",),
            vmem_limit_bytes=vmem_limit),
    )(f)

    pos_count = n_views - 1
    # n_views == 1 -> 0/0 in the reference (NaN); keep the same behavior.
    inv_pos_count = (1.0 / pos_count) if pos_count > 0 else float("nan")

    kernel = functools.partial(
        _confusion_tile_kernel,
        tm=tm, tn=tn, acc_w=acc_w, n_valid=n, n_views=n_views,
        groups_tile_aligned=groups_tile_aligned,
        has_col_padding=has_col_padding,
        scale_out=float(temperature) / float(base_temperature),
        inv_pos_count=inv_pos_count)

    # fcol is re-streamed once per row tile -> deeper pipelining on v5e only.
    if fcol_buffers != 2:
        fcol_spec = pl.BlockSpec((tn, d_pad), lambda i, j: (j, 0),
                                 pipeline_mode=pl.Buffered(fcol_buffers))
    else:
        fcol_spec = pl.BlockSpec((tn, d_pad), lambda i, j: (j, 0))

    # --- main: tiled NxN pass with online per-row accumulation ---------------
    per_row = pl.pallas_call(
        kernel,
        out_shape=jax.ShapeDtypeStruct((n_pad, 128), jnp.float32),
        grid_spec=pltpu.PrefetchScalarGridSpec(
            num_scalar_prefetch=0,
            grid=(n_pad // tm, n_pad // tn),
            in_specs=[pl.BlockSpec((tm, d_pad), lambda i, j: (i, 0)),
                      fcol_spec],
            out_specs=pl.BlockSpec((tm, 128), lambda i, j: (i, 0)),
            scratch_shapes=[pltpu.VMEM((tm, acc_w), jnp.float32),
                            pltpu.VMEM((tm, acc_w), jnp.float32)]),
        compiler_params=pltpu.CompilerParams(
            dimension_semantics=("parallel", "arbitrary"),
            vmem_limit_bytes=vmem_limit),
    )(fn, fn)

    # Final scalar mean over the N real rows (tiny XLA reduce in the wrapper).
    return jnp.mean(per_row[:n, 0])


# ---------------------------------------------------------------------------
# Pure-JAX reference (mirrors the PyTorch module exactly, f32 throughout).
# ---------------------------------------------------------------------------
def _reference_confusion_loss(features, temperature=0.07, base_temperature=0.07):
    bsz, n_views = features.shape[0], features.shape[1]
    f = features.reshape(bsz, n_views, -1)
    cf = jnp.transpose(f, (1, 0, 2)).reshape(bsz * n_views, -1).astype(jnp.float32)
    cf = cf / jnp.maximum(jnp.linalg.norm(cf, axis=1, keepdims=True), 1e-12)
    sim = (cf @ cf.T) / temperature
    n = bsz * n_views
    eye_big = jnp.tile(jnp.eye(bsz, dtype=jnp.float32), (n_views, n_views))
    logits_mask = 1.0 - jnp.eye(n, dtype=jnp.float32)
    mask = eye_big * logits_mask
    exp_logits = jnp.exp(sim) * logits_mask
    log_prob = sim - jnp.log(exp_logits.sum(1, keepdims=True))
    mean_log_prob_pos = (mask * log_prob).sum(1) / mask.sum(1)
    loss = -(temperature / base_temperature) * mean_log_prob_pos
    return loss.mean()


if __name__ == "__main__":
    key = jax.random.PRNGKey(0)

    # Test 1: small 4-D features [bsz=8, n_views=2, C=4, S=8] -> N=16, D=32.
    feats1 = jax.random.normal(key, (8, 2, 4, 8), dtype=jnp.float32)
    loss1 = jax.block_until_ready(confusion_loss(feats1))
    ref1 = _reference_confusion_loss(feats1)
    assert jnp.isfinite(loss1)
    # bf16 MXU operands => tolerance relaxed vs pure f32.
    assert jnp.allclose(loss1, ref1, atol=3e-2, rtol=3e-2), (loss1, ref1)

    # Test 2: exercises multi-tile grid, row padding, in-kernel feature-dim
    # padding and the masked / unmasked tile gating: N=192, D=200.
    feats2 = jax.random.normal(jax.random.PRNGKey(0), (96, 2, 200),
                               dtype=jnp.float32)
    loss2 = jax.block_until_ready(confusion_loss(feats2))
    ref2 = _reference_confusion_loss(feats2)
    assert jnp.isfinite(loss2)
    assert jnp.allclose(loss2, ref2, atol=3e-2, rtol=3e-2), (loss2, ref2)

    print("KERNEL_OK")
</pallas_src>

<mosaic_0001>
module attributes {stable_mosaic.version = 11 : i64} {
  func.func @_normalize_kernel(%arg0: i32, %arg1: memref<16x32xf32, #tpu.memory_space<vmem>>, %arg2: memref<16x128xbf16, #tpu.memory_space<vmem>>) attributes {dimension_semantics = [#tpu.dimension_semantics<parallel>], iteration_bounds = array<i64: 1>, scalar_prefetch = 0 : i64, scratch_operands = 0 : i64, tpu.core_type = #tpu.core_type<tc>, window_params = [{transform_indices = @transform_0, window_bounds = array<i64: 16, 32>}, {transform_indices = @transform_1, window_bounds = array<i64: 16, 128>}]} {
    %c0 = arith.constant 0 : index
    %c0_0 = arith.constant 0 : index
    %0 = vector.load %arg1[%c0, %c0_0] : memref<16x32xf32, #tpu.memory_space<vmem>>, vector<16x32xf32>
    %1 = arith.mulf %0, %0 : vector<16x32xf32>
    %cst = arith.constant dense<0.000000e+00> : vector<16xf32>
    %2 = vector.multi_reduction <add>, %1, %cst [1] : vector<16x32xf32> to vector<16xf32>
    %3 = vector.shape_cast %2 : vector<16xf32> to vector<16x1xf32>
    %cst_1 = arith.constant 1.000000e-24 : f32
    %4 = vector.broadcast %cst_1 : f32 to vector<16x1xf32>
    %5 = arith.maximumf %3, %4 : vector<16x1xf32>
    %6 = math.rsqrt %5 : vector<16x1xf32>
    %cst_2 = arith.constant 3.77964473 : f32
    %7 = vector.broadcast %cst_2 : f32 to vector<16x1xf32>
    %8 = arith.mulf %6, %7 : vector<16x1xf32>
    %9 = vector.broadcast %8 : vector<16x1xf32> to vector<16x32xf32>
    %10 = arith.mulf %0, %9 : vector<16x32xf32>
    %11 = arith.truncf %10 : vector<16x32xf32> to vector<16x32xbf16>
    %cst_3 = arith.constant 0.000000e+00 : bf16
    %12 = vector.broadcast %cst_3 : bf16 to vector<16x128xbf16>
    %c0_4 = arith.constant 0 : index
    %c0_5 = arith.constant 0 : index
    %13 = vector.load %arg2[%c0_4, %c0_5] : memref<16x128xbf16, #tpu.memory_space<vmem>>, vector<16x128xbf16>
    tpu.vector_store %arg2[%c0_4, %c0_5], %12 {strides = array<i32>} : memref<16x128xbf16, #tpu.memory_space<vmem>>, vector<16x128xbf16>,
    %c0_6 = arith.constant 0 : index
    %c0_7 = arith.constant 0 : index
    %14 = vector.load %arg2[%c0_6, %c0_7] : memref<16x128xbf16, #tpu.memory_space<vmem>>, vector<16x32xbf16>
    tpu.vector_store %arg2[%c0_6, %c0_7], %11 {strides = array<i32>} : memref<16x128xbf16, #tpu.memory_space<vmem>>, vector<16x32xbf16>,
    return
  }
  func.func @transform_0(%arg0: i32) -> (i32, i32) {
    %c0_i32 = arith.constant 0 : i32
    %c0_i32_0 = arith.constant 0 : i32
    return %arg0, %c0_i32 : i32, i32
  }
  func.func @transform_1(%arg0: i32) -> (i32, i32) {
    %c0_i32 = arith.constant 0 : i32
    %c0_i32_0 = arith.constant 0 : i32
    return %arg0, %c0_i32 : i32, i32
  }
}

</mosaic_0001>

<bundles_post_ra>
// kernel: tpu_custom_call.1
= control target key start
LH: loop header
LB: loop body
LE: loop exit
PB: predicated region body
PF: predicated region fallthrough
CT: control target
= control target key end

     0   :  { %6 = vsyncpa [#allocation3], 0  ;;  %s177_s0 = inlined_call_operand.hbm [shape: f32[16,32], index: 0, kind: input, shape index: {}]   ;;  %s178_s1 = inlined_call_operand.hbm [shape: bf16[16,128], index: 1, kind: output, shape index: {}]  }
   0x1   :  { %7 = vsyncpa [#allocation4], 0  ;;  %s136_s6 = smov [#allocation2]   ;;  %s88_s10 = scalar_lea.hbm %s177_s0, 256 }
   0x2   :  { %s13_s7 = sshll.u32 %s136_s6, 4  ;;  %p89_p0 = scmp.ne.s32.totalorder %s177_s0, %s88_s10  ;;  %s14_s7 = int_to_ptr.vmem [resolvable:$true] %s13_s7 }
   0x3   :  { %p92_p1 = scmp.lt.u32.totalorder %s88_s10, %s177_s0 }
   0x5   :  { %p94_p2 = pnand %p92_p1, %p89_p0 }
   0x7   :  { %97 = shalt.err (!%p94_p2)
}
   0x8   :  { %s98_s15 = scalar_lea.vmem %s14_s7, 256  ;;  %p103_p4 = scmp.lt.s32.totalorder %s14_s7, %s14_s7 }
   0x9   :  { %p99_p3 = scmp.ne.s32.totalorder %s14_s7, %s98_s15  ;;  %p104_p5 = scmp.lt.s32.totalorder %s98_s15, %s98_s15 }
   0xb   :  { %p105_p6 = por %p104_p5, %p103_p4 }
   0xd   :  { %p106_p7 = pnand %p105_p6, %p99_p3 }
   0xf   :  { %109 = shalt.err (!%p106_p7)
}
  0x10   :  { %s137_s16 = smov 128   ;;  %s138_s17 = smov 8  }
  0x11   :  { %19 = dma.hbm_to_vmem [thread:$0]  %s177_s0, 256, %s14_s7, [#allocation3], %s137_s16, %s137_s16, %s138_s17  }
  0x12   :  { %132 = dma.done.wait [#allocation3], 256  }
  0x13   :  { %133 = vsyncadd [#allocation3], 4294967040  ;;  %v139_v0 = vmov 0   ;;  %v24_v1 = vld [vmem:[#allocation2] sm:$0xff]  ;;  %vm28_vm0 = vcmask 261120   ;;  %v25_v2 = vld [vmem:[#allocation2 + $0x8] sm:$0xff] }
  0x14   :  { %44 = vst [vmem:[#allocation5] sm:$0xf] %v139_v0  ;;  %45 = vst [vmem:[#allocation5 + $0x4] sm:$0xf] %v139_v0  ;;  %v26_v3 = vmul.f32 %v24_v1, %v24_v1  ;;  %v27_v4 = vmul.f32 %v25_v2, %v25_v2  ;;  %vm53_vm1 = vcmask 257024   ;;  %s140_s0 = smov [#allocation5]  }
  0x15   :  { %s61_s20 = sshll.u32 %s140_s0, 4  ;;  %s62_s20 = int_to_ptr.vmem [resolvable:$true] %s61_s20 }
  0x16   :  { %v29_v5 = vsel %vm28_vm0, %v26_v3, 0.0  ;;  %v32_v6 = vsel %vm28_vm0, %v27_v4, 0.0  ;;  %s110_s21 = scalar_lea.vmem %s62_s20, 128  ;;  %p115_p9 = scmp.lt.s32.totalorder %s62_s20, %s62_s20 }
  0x17   :  { %30 = vadd.xlane.f32.xlu0 %v29_v5  ;;  %p111_p8 = scmp.ne.s32.totalorder %s62_s20, %s110_s21  ;;  %p116_p10 = scmp.lt.s32.totalorder %s110_s21, %s110_s21 }
  0x19   :  { %p117_p11 = por %p116_p10, %p115_p9 }
  0x1b   :  { %33 = vadd.xlane.f32.xlu0 %v32_v6  ;;  %p118_p12 = pnand %p117_p11, %p111_p8 }
  0xa4   :  { %v31_v7 = vpop.xlane.xlu0 %30 }
  0xa5   :  { %v35_v8 = vmax.f32 %v31_v7, 1e-24 }
  0xa7   :  { %84 = vrsqrt.f32 %v35_v8 }
  0xa8   :  { %v34_v9 = vpop.xlane.xlu0 %33 }
  0xa9   :  { %v36_v10 = vmax.f32 %v34_v9, 1e-24 }
  0xab   :  { %86 = vrsqrt.f32 %v36_v10 }
  0xb1   :  { %v85_v11 = vpop.eup %84 }
  0xb2   :  { %v39_v12 = vmul.f32 3.7796447, %v85_v11 }
  0xb4   :  { %v41_v13 = vmul.f32 %v39_v12, %v24_v1 }
  0xb5   :  { %v87_v14 = vpop.eup %86 }
  0xb6   :  { %v75_v15 = vpack.c.bf16 %v41_v13, %v41_v13  ;;  %v40_v16 = vmul.f32 3.7796447, %v87_v14 }
  0xb8   :  { %v42_v17 = vmul.f32 %v40_v16, %v25_v2  ;;  %54 = vst.msk [vmem:[#allocation5] sm:$0xf] %vm53_vm1, %v75_v15 }
  0xba   :  { %v76_v18 = vpack.c.bf16 %v42_v17, %v42_v17 }
  0xbc   :  { %55 = vst.msk [vmem:[#allocation5 + $0x4] sm:$0xf] %vm53_vm1, %v76_v18 }
  0xbd   :  { %121 = shalt.err (!%p118_p12)
}
  0xbe   :  { %s122_s24 = scalar_lea.hbm %s178_s1, 128 }
  0xbf   :  { %p123_p13 = scmp.ne.s32.totalorder %s178_s1, %s122_s24  ;;  %p126_p0 = scmp.lt.u32.totalorder %s122_s24, %s178_s1 }
  0xc1   :  { %p128_p1 = pnand %p126_p0, %p123_p13 }
  0xc3   :  { %131 = shalt.err (!%p128_p1)
}
  0xc4   :  { %s141_s29 = smov 64   ;;  %s142_s30 = smov 4  }
  0xc5   :  { %67 = dma.vmem_to_hbm [thread:$0]  %s62_s20, 128, %s178_s1, [#allocation4], %s141_s29, %s141_s29, %s142_s30  }
  0xc6   :  { %134 = dma.done.wait [#allocation4], 128  }
  0xc7   :  { %135 = vsyncadd [#allocation4], 4294967168 }
  0xc8   :  { %71 = vsyncpa [#allocation3], 1 }
  0xc9   :  { %72 = vsyncpa [#allocation4], 1 }

</bundles_post_ra>
